<compile_context>
chip_gen: v5e
topology: v5e:2x2
jax: 0.10.0
libtpu: 0.0.40
codegen_flags: <defaults>
</compile_context>

<pallas_src>
import functools

import jax
import jax.numpy as jnp
from jax.experimental import pallas as pl
from jax.experimental.pallas import tpu as pltpu


def _synthesis_v5_kernel(x_ref, wf_ref, vec_ref, o_ref, *, eps):
    # x in native dtype; MXU accumulates in f32.
    x = x_ref[...]                                            # (tm, H)

    # Fused linear: hidden = x @ Wf_t   (Wf_t = Wv^T @ Wd^T, prebuilt in wrapper)
    h = jnp.dot(x, wf_ref[...], preferred_element_type=jnp.float32)

    vec = vec_ref[...].astype(jnp.float32)                    # (3, H)
    bf = vec[0:1, :]                                          # fused bias
    gamma = vec[1:2, :]
    beta = vec[2:3, :]

    # out_dropout is identity in eval mode; residual add in f32.
    y = h + bf + x.astype(jnp.float32)                        # (tm, H)

    # TF-style LayerNorm over the last dim; rsqrt runs on the EUP.
    u = jnp.mean(y, axis=-1, keepdims=True)
    d = y - u
    s = jnp.mean(d * d, axis=-1, keepdims=True)
    y_norm = d * jax.lax.rsqrt(s + eps)
    out = gamma * y_norm + beta

    o_ref[...] = out.astype(o_ref.dtype)


def synthesis_v5(input_tensor, attention_mask, params, *, eps=1e-12, tm=None):
    """input_tensor: (B, S, H). attention_mask is unused (matches PyTorch forward)."""
    del attention_mask  # unused by SynthesisV5.forward
    B, S, H = input_tensor.shape
    M = B * S
    x2d = input_tensor.reshape(M, H)

    # ---- eval-mode fusion of the two linear layers (exact: no nonlinearity,
    # ---- dropout = identity).  Wf_t[k, o] = sum_j Wv[j, k] * Wd[o, j].
    wf_t = jnp.einsum("jk,oj->ko", params["value_w"], params["dense_w"],
                      preferred_element_type=jnp.float32)
    wf_t = wf_t.astype(input_tensor.dtype)                    # match x dtype for MXU
    bf = jnp.dot(params["dense_w"], params["value_b"]) + params["dense_b"]
    vecs = jnp.stack(
        [bf.astype(jnp.float32),
         params["ln_w"].astype(jnp.float32),
         params["ln_b"].astype(jnp.float32)], axis=0)         # (3, H)

    # ---- tile size: one big block for small M, else up to 1024 rows/step.
    # (On v7x, keep >=2 grid steps at scale so both TensorCores get work.)
    if tm is None:
        tm = M if M <= 1024 else 1024
    tm = max(8, (min(tm, M) // 8) * 8)
    Mp = ((M + tm - 1) // tm) * tm
    if Mp != M:
        x2d = jnp.pad(x2d, ((0, Mp - M), (0, 0)))             # padded rows discarded later

    grid = (Mp // tm,)
    out2d = pl.pallas_call(
        functools.partial(_synthesis_v5_kernel, eps=eps),
        out_shape=jax.ShapeDtypeStruct((Mp, H), input_tensor.dtype),
        grid_spec=pltpu.PrefetchScalarGridSpec(
            num_scalar_prefetch=0,
            grid=grid,
            in_specs=[
                pl.BlockSpec((tm, H), lambda i: (i, 0)),      # x rows
                pl.BlockSpec((H, H), lambda i: (0, 0)),       # fused weight (VMEM-resident)
                pl.BlockSpec((3, H), lambda i: (0, 0)),       # [bf; gamma; beta]
            ],
            out_specs=pl.BlockSpec((tm, H), lambda i: (i, 0)),
        ),
        compiler_params=pltpu.CompilerParams(
            dimension_semantics=("parallel",)),
    )(x2d, wf_t, vecs)

    if Mp != M:
        out2d = out2d[:M]
    return out2d.reshape(B, S, H)


def reference_jax(input_tensor, params, eps=1e-12):
    # Unfused reference, exactly mirroring the PyTorch module (eval mode).
    x = input_tensor
    value = x @ params["value_w"].T + params["value_b"]
    hidden = value @ params["dense_w"].T + params["dense_b"]
    y = hidden + x
    u = y.mean(-1, keepdims=True)
    s = ((y - u) ** 2).mean(-1, keepdims=True)
    yn = (y - u) / jnp.sqrt(s + eps)
    return params["ln_w"] * yn + params["ln_b"]


if __name__ == "__main__":
    # Small shapes implied by the module: batch=2, seq=8, hidden=32.
    B, S, H = 2, 8, 32
    key = jax.random.PRNGKey(0)
    k_x, k_m, k_vw, k_vb, k_dw, k_db = jax.random.split(key, 6)

    x = jax.random.normal(k_x, (B, S, H), dtype=jnp.float32)
    attention_mask = jax.random.normal(k_m, (B, 1, S, S), dtype=jnp.float32)  # unused

    # Deterministic parameter init (nn.Linear-like scale).
    bound = 1.0 / (H ** 0.5)
    params = {
        "value_w": jax.random.uniform(k_vw, (H, H), jnp.float32, -bound, bound),
        "value_b": jax.random.uniform(k_vb, (H,), jnp.float32, -bound, bound),
        "dense_w": jax.random.uniform(k_dw, (H, H), jnp.float32, -bound, bound),
        "dense_b": jax.random.uniform(k_db, (H,), jnp.float32, -bound, bound),
        "ln_w": jnp.ones((H,), jnp.float32),
        "ln_b": jnp.zeros((H,), jnp.float32),
    }
    # TODO(synk): attn_scores / attn_dropout / out_dropout are dead or identity
    # in the eval-mode forward; intentionally omitted.

    out = synthesis_v5(x, attention_mask, params)
    out = jax.block_until_ready(out)

    ref = reference_jax(x, params)
    # Slightly looser tolerance: the fused (x@(Wv^T Wd^T)) matmul differs from the
    # unfused reference only by f32 re-association rounding (~1e-6).
    assert jnp.allclose(out, ref, atol=1e-4, rtol=1e-4), "mismatch vs reference"
    print("KERNEL_OK")
</pallas_src>

<mosaic_0001>
module attributes {stable_mosaic.version = 11 : i64} {
  func.func @_synthesis_v5_kernel(%arg0: i32, %arg1: memref<16x32xf32, #tpu.memory_space<vmem>>, %arg2: memref<32x32xf32, #tpu.memory_space<vmem>>, %arg3: memref<3x32xf32, #tpu.memory_space<vmem>>, %arg4: memref<16x32xf32, #tpu.memory_space<vmem>>) attributes {dimension_semantics = [#tpu.dimension_semantics<parallel>], iteration_bounds = array<i64: 1>, scalar_prefetch = 0 : i64, scratch_operands = 0 : i64, tpu.core_type = #tpu.core_type<tc>, window_params = [{transform_indices = @transform_0, window_bounds = array<i64: 16, 32>}, {pipeline_mode = #tpu.pipeline_mode<synchronous>, transform_indices = @transform_1, window_bounds = array<i64: 32, 32>}, {pipeline_mode = #tpu.pipeline_mode<synchronous>, transform_indices = @transform_2, window_bounds = array<i64: 3, 32>}, {transform_indices = @transform_3, window_bounds = array<i64: 16, 32>}]} {
    %c0 = arith.constant 0 : index
    %c0_0 = arith.constant 0 : index
    %0 = vector.load %arg1[%c0, %c0_0] : memref<16x32xf32, #tpu.memory_space<vmem>>, vector<16x32xf32>
    %c0_1 = arith.constant 0 : index
    %c0_2 = arith.constant 0 : index
    %1 = vector.load %arg2[%c0_1, %c0_2] : memref<32x32xf32, #tpu.memory_space<vmem>>, vector<32x32xf32>
    %cst = arith.constant dense<0.000000e+00> : vector<16x32xf32>
    %2 = tpu.matmul %0, %1, %cst {dimension_numbers = #tpu.dot_dimension_numbers<[1], [0], [0], [1], [0, 0, 1, 1], [], []>} : vector<16x32xf32>, vector<32x32xf32>, vector<16x32xf32> -> vector<16x32xf32>
    %c0_3 = arith.constant 0 : index
    %c0_4 = arith.constant 0 : index
    %3 = vector.load %arg3[%c0_3, %c0_4] : memref<3x32xf32, #tpu.memory_space<vmem>>, vector<3x32xf32>
    %4 = vector.extract_strided_slice %3 {offsets = [0, 0], sizes = [1, 32], strides = [1, 1]} : vector<3x32xf32> to vector<1x32xf32>
    %5 = vector.extract_strided_slice %3 {offsets = [1, 0], sizes = [1, 32], strides = [1, 1]} : vector<3x32xf32> to vector<1x32xf32>
    %6 = vector.extract_strided_slice %3 {offsets = [2, 0], sizes = [1, 32], strides = [1, 1]} : vector<3x32xf32> to vector<1x32xf32>
    %7 = vector.broadcast %4 : vector<1x32xf32> to vector<16x32xf32>
    %8 = arith.addf %2, %7 : vector<16x32xf32>
    %9 = arith.addf %8, %0 : vector<16x32xf32>
    %cst_5 = arith.constant dense<0.000000e+00> : vector<16xf32>
    %10 = vector.multi_reduction <add>, %9, %cst_5 [1] : vector<16x32xf32> to vector<16xf32>
    %11 = vector.shape_cast %10 : vector<16xf32> to vector<16x1xf32>
    %cst_6 = arith.constant 3.200000e+01 : f32
    %12 = vector.broadcast %cst_6 : f32 to vector<16x1xf32>
    %13 = arith.divf %11, %12 : vector<16x1xf32>
    %14 = vector.broadcast %13 : vector<16x1xf32> to vector<16x32xf32>
    %15 = arith.subf %9, %14 : vector<16x32xf32>
    %16 = arith.mulf %15, %15 : vector<16x32xf32>
    %cst_7 = arith.constant dense<0.000000e+00> : vector<16xf32>
    %17 = vector.multi_reduction <add>, %16, %cst_7 [1] : vector<16x32xf32> to vector<16xf32>
    %18 = vector.shape_cast %17 : vector<16xf32> to vector<16x1xf32>
    %cst_8 = arith.constant 3.200000e+01 : f32
    %19 = vector.broadcast %cst_8 : f32 to vector<16x1xf32>
    %20 = arith.divf %18, %19 : vector<16x1xf32>
    %cst_9 = arith.constant 9.99999996E-13 : f32
    %21 = vector.broadcast %cst_9 : f32 to vector<16x1xf32>
    %22 = arith.addf %20, %21 : vector<16x1xf32>
    %23 = math.rsqrt %22 : vector<16x1xf32>
    %24 = vector.broadcast %23 : vector<16x1xf32> to vector<16x32xf32>
    %25 = arith.mulf %15, %24 : vector<16x32xf32>
    %26 = vector.broadcast %5 : vector<1x32xf32> to vector<16x32xf32>
    %27 = arith.mulf %26, %25 : vector<16x32xf32>
    %28 = vector.broadcast %6 : vector<1x32xf32> to vector<16x32xf32>
    %29 = arith.addf %27, %28 : vector<16x32xf32>
    %c0_10 = arith.constant 0 : index
    %c0_11 = arith.constant 0 : index
    %30 = vector.load %arg4[%c0_10, %c0_11] : memref<16x32xf32, #tpu.memory_space<vmem>>, vector<16x32xf32>
    tpu.vector_store %arg4[%c0_10, %c0_11], %29 {strides = array<i32>} : memref<16x32xf32, #tpu.memory_space<vmem>>, vector<16x32xf32>,
    return
  }
  func.func @transform_0(%arg0: i32) -> (i32, i32) {
    %c0_i32 = arith.constant 0 : i32
    %c0_i32_0 = arith.constant 0 : i32
    return %arg0, %c0_i32 : i32, i32
  }
  func.func @transform_1(%arg0: i32) -> (i32, i32) {
    %c0_i32 = arith.constant 0 : i32
    %c0_i32_0 = arith.constant 0 : i32
    %c0_i32_1 = arith.constant 0 : i32
    return %c0_i32, %c0_i32_0 : i32, i32
  }
  func.func @transform_2(%arg0: i32) -> (i32, i32) {
    %c0_i32 = arith.constant 0 : i32
    %c0_i32_0 = arith.constant 0 : i32
    %c0_i32_1 = arith.constant 0 : i32
    return %c0_i32, %c0_i32_0 : i32, i32
  }
  func.func @transform_3(%arg0: i32) -> (i32, i32) {
    %c0_i32 = arith.constant 0 : i32
    %c0_i32_0 = arith.constant 0 : i32
    return %arg0, %c0_i32 : i32, i32
  }
}

</mosaic_0001>

<bundles_post_ra>
// kernel: tpu_custom_call.1
= control target key start
LH: loop header
LB: loop body
LE: loop exit
PB: predicated region body
PF: predicated region fallthrough
CT: control target
= control target key end

     0   :  { %8 = vsyncpa [#allocation3], 0  ;;  %s361_s0 = inlined_call_operand.hbm [shape: f32[16,32], index: 0, kind: input, shape index: {}]   ;;  %s362_s1 = inlined_call_operand.hbm [shape: f32[32,32], index: 1, kind: input, shape index: {}]   ;;  %s363_s2 = inlined_call_operand.hbm [shape: f32[3,32], index: 2, kind: input, shape index: {}]   ;;  %s364_s3 = inlined_call_operand.hbm [shape: f32[16,32], index: 3, kind: output, shape index: {}]  }
   0x1   :  { %9 = vsyncpa [#allocation6], 0 }
   0x2   :  { %10 = vsyncpa [#allocation4], 0  ;;  %s28_s14 = sshll.u32 %s362_s1, 4  ;;  %s300_s15 = smov [#allocation5]   ;;  %s29_s14 = int_to_ptr.hbm [resolvable:$true] %s28_s14 }
   0x3   :  { %s30_s16 = sshll.u32 %s300_s15, 4  ;;  %s15_s19 = sshll.u32 %s361_s0, 4  ;;  %s31_s16 = int_to_ptr.vmem [resolvable:$true] %s30_s16  ;;  %s16_s19 = int_to_ptr.hbm [resolvable:$true] %s15_s19 }
   0x4   :  { %s301_s20 = smov 128   ;;  %s302_s21 = smov 8  }
   0x5   :  { %36 = dma.hbm_to_vmem [thread:$0]  %s29_s14, 512, %s31_s16, [#allocation6], %s301_s20, %s301_s20, %s302_s21  }
   0x6   :  { %s303_s22 = smov [#allocation2]   ;;  %s42_s1 = sshll.u32 %s363_s2, 4  ;;  %s43_s1 = int_to_ptr.hbm [resolvable:$true] %s42_s1 }
   0x7   :  { %s17_s23 = sshll.u32 %s303_s22, 4  ;;  %s304_s0 = smov [#allocation7]   ;;  %s18_s23 = int_to_ptr.vmem [resolvable:$true] %s17_s23 }
   0x8   :  { %23 = dma.hbm_to_vmem [thread:$0]  %s16_s19, 256, %s18_s23, [#allocation3], %s301_s20, %s301_s20, %s302_s21  }
   0x9   :  { %s44_s26 = sshll.u32 %s304_s0, 4  ;;  %s45_s26 = int_to_ptr.vmem [resolvable:$true] %s44_s26 }
   0xa   :  { %47 = dma.hbm_to_vmem [thread:$0]  %s43_s1, 64, %s45_s26, [#allocation6]  }
   0xb   :  { %294 = dma.done.wait [#allocation3], 256  }
   0xc   :  { %295 = vsyncadd [#allocation3], 4294967040 }
   0xd   :  { %296 = dma.done.wait [#allocation6], 576  }
   0xe   :  { %297 = vsyncadd [#allocation6], 4294966720  ;;  %v65_v0 = vld [vmem:[#allocation5 + $0x18] sm:$0xff]  ;;  %v64_v1 = vld [vmem:[#allocation5 + $0x10] sm:$0xff]  ;;  %vm68_vm0 = vcmask 261120   ;;  %v305_v16 = vmov 32.0  }
   0xf   :  { %87 = vmatpush.msra.mxu0 %v65_v0  ;;  %181 = vmatpush.msra.mxu1 %v65_v0  ;;  %v63_v2 = vld [vmem:[#allocation5 + $0x8] sm:$0xff]  ;;  %v62_v3 = vld [vmem:[#allocation5] sm:$0xff]  ;;  %v60_v4 = vld [vmem:[#allocation2] sm:$0xff]  ;;  %192 = vrcp.f32 %v305_v16  ;;  %s306_s2 = smov [#allocation8]   ;;  %s165_s30 = sshll.u32 %s364_s3, 4  ;;  %s166_s30 = int_to_ptr.hbm [resolvable:$true] %s165_s30 }
  0x10   :  { %v61_v5 = vld [vmem:[#allocation2 + $0x8] sm:$0xff]  ;;  %v344_v6 = vld [vmem:[#allocation7] sm:$0x7]  ;;  %s163_s27 = sshll.u32 %s306_s2, 4  ;;  %s164_s27 = int_to_ptr.vmem [resolvable:$true] %s163_s27 }
  0x11   :  { %88 = vmatpush.msra.mxu0 %v64_v1  ;;  %182 = vmatpush.msra.mxu1 %v64_v1  ;;  %v67_v7 = vperm.slane %v344_v6, 0  ;;  %v151_v47 = vperm.slane %v344_v6, 1  ;;  %v154_v50 = vperm.slane %v344_v6, 2 }
  0x13   :  { %89 = vmatpush.msra.mxu0 %v63_v2  ;;  %183 = vmatpush.msra.mxu1 %v63_v2 }
  0x15   :  { %90 = vmatpush.msra.mxu0 %v62_v3  ;;  %184 = vmatpush.msra.mxu1 %v62_v3  ;;  %v193_v17 = vpop.eup %192 }
  0x16   :  { %179 = vmatmul.msk.f32.vlgmr.msra.gmra.mxu0 %vm68_vm0, %v60_v4  ;;  %180 = vmatmul.msk.f32.vlgmr.msra.gmra.mxu1 %vm68_vm0, %v61_v5  ;;  %v107_v18 = vmul.f32 32.0, %v193_v17  ;;  %vm111_vm1 = vweird.f32 %v193_v17 }
  0x18   :  { %v108_v19 = vsub.f32 1.0, %v107_v18 }
  0x1a   :  { %v109_v20 = vmul.f32 %v193_v17, %v108_v19 }
  0x1c   :  { %v110_v21 = vadd.f32 %v193_v17, %v109_v20 }
  0x1e   :  { %v112_v22 = vsel %vm111_vm1, %v193_v17, %v110_v21 }
  0x93   :  { %v92_v8 = vpop.f32.mrf.mxu0  ;;  %v95_v9 = vpop.f32.mrf.mxu1 }
  0x94   :  { %v93_v10 = vadd.f32 %v92_v8, %v67_v7  ;;  %v96_v12 = vadd.f32 %v95_v9, %v67_v7 }
  0x96   :  { %v98_v11 = vadd.f32 %v93_v10, %v60_v4  ;;  %v99_v14 = vadd.f32 %v96_v12, %v61_v5 }
  0x98   :  { %v100_v13 = vsel %vm68_vm0, %v98_v11, 0.0  ;;  %v103_v15 = vsel %vm68_vm0, %v99_v14, 0.0 }
  0x99   :  { %101 = vadd.xlane.f32.xlu0 %v100_v13 }
  0xa1   :  { %104 = vadd.xlane.f32.xlu0 %v103_v15 }
 0x10c   :  { %v102_v23 = vpop.xlane.xlu0 %101 }
 0x10d   :  { %v113_v24 = vmul.f32 %v112_v22, %v102_v23 }
 0x10f   :  { %v115_v25 = vsub.f32 %v98_v11, %v113_v24 }
 0x111   :  { %v117_v26 = vmul.f32 %v115_v25, %v115_v25 }
 0x113   :  { %v119_v27 = vsel %vm68_vm0, %v117_v26, 0.0 }
 0x114   :  { %120 = vadd.xlane.f32.xlu1 %v119_v27  ;;  %v105_v28 = vpop.xlane.xlu0 %104 }
 0x115   :  { %v114_v29 = vmul.f32 %v112_v22, %v105_v28 }
 0x117   :  { %v116_v30 = vsub.f32 %v99_v14, %v114_v29 }
 0x119   :  { %v118_v31 = vmul.f32 %v116_v30, %v116_v30 }
 0x11b   :  { %v122_v32 = vsel %vm68_vm0, %v118_v31, 0.0 }
 0x11c   :  { %123 = vadd.xlane.f32.xlu1 %v122_v32 }
 0x187   :  { %v121_v33 = vpop.xlane.xlu1 %120 }
 0x188   :  { %v125_v34 = vmul.f32 %v121_v33, %v112_v22 }
 0x18a   :  { %v127_v35 = vadd.f32 1e-12, %v125_v34 }
 0x18c   :  { %194 = vrsqrt.f32 %v127_v35  ;;  %vm135_vm3 = vweird.f32 %v127_v35 }
 0x18f   :  { %v124_v36 = vpop.xlane.xlu1 %123 }
 0x190   :  { %v126_v37 = vmul.f32 %v124_v36, %v112_v22 }
 0x192   :  { %v195_v38 = vpop.eup %194  ;;  %v128_v39 = vadd.f32 1e-12, %v126_v37 }
 0x193   :  { %v130_v40 = vmul.f32 %v195_v38, %v127_v35  ;;  %vm136_vm2 = vweird.f32 %v195_v38 }
 0x194   :  { %196 = vrsqrt.f32 %v128_v39  ;;  %vm137_vm4 = vmor %vm135_vm3, %vm136_vm2  ;;  %vm145_vm6 = vweird.f32 %v128_v39 }
 0x195   :  { %v131_v41 = vmul.f32 %v195_v38, %v130_v40 }
 0x197   :  { %v132_v42 = vmul.f32 0.5, %v131_v41 }
 0x199   :  { %v133_v43 = vsub.f32 1.5, %v132_v42 }
 0x19a   :  { %v197_v44 = vpop.eup %196 }
 0x19b   :  { %v134_v45 = vmul.f32 %v195_v38, %v133_v43  ;;  %v140_v46 = vmul.f32 %v197_v44, %v128_v39  ;;  %vm146_vm5 = vweird.f32 %v197_v44 }
 0x19c   :  { %vm147_vm7 = vmor %vm145_vm6, %vm146_vm5 }
 0x19d   :  { %v138_v48 = vsel %vm137_vm4, %v195_v38, %v134_v45  ;;  %v141_v49 = vmul.f32 %v197_v44, %v140_v46 }
 0x19e   :  { %v149_v51 = vmul.f32 %v138_v48, %v115_v25 }
 0x19f   :  { %v142_v52 = vmul.f32 0.5, %v141_v49 }
 0x1a0   :  { %v152_v53 = vmul.f32 %v151_v47, %v149_v51 }
 0x1a1   :  { %v143_v54 = vsub.f32 1.5, %v142_v52 }
 0x1a2   :  { %v155_v55 = vadd.f32 %v154_v50, %v152_v53 }
 0x1a3   :  { %v144_v56 = vmul.f32 %v197_v44, %v143_v54 }
 0x1a4   :  { %157 = vst.msk [vmem:[#allocation8] sm:$0xff] %vm68_vm0, %v155_v55 }
 0x1a5   :  { %v148_v57 = vsel %vm147_vm7, %v197_v44, %v144_v56 }
 0x1a6   :  { %v150_v58 = vmul.f32 %v148_v57, %v116_v30 }
 0x1a8   :  { %v153_v59 = vmul.f32 %v151_v47, %v150_v58 }
 0x1aa   :  { %v156_v60 = vadd.f32 %v154_v50, %v153_v59 }
 0x1ac   :  { %158 = vst.msk [vmem:[#allocation8 + $0x8] sm:$0xff] %vm68_vm0, %v156_v60 }
 0x1ad   :  { %171 = dma.vmem_to_hbm [thread:$0]  %s164_s27, 256, %s166_s30, [#allocation4], %s301_s20, %s301_s20, %s302_s21  }
 0x1ae   :  { %298 = dma.done.wait [#allocation4], 256  }
 0x1af   :  { %299 = vsyncadd [#allocation4], 4294967040 }
 0x1b0   :  { %176 = vsyncpa [#allocation3], 1 }
 0x1b1   :  { %177 = vsyncpa [#allocation6], 1 }
 0x1b2   :  { %178 = vsyncpa [#allocation4], 1 }

</bundles_post_ra>
